<compile_context>
chip_gen: v7x
topology: tpu7x:2x2x1
jax: 0.10.0
libtpu: 0.0.40
codegen_flags: <defaults>
</compile_context>

<pallas_src>
import functools

import jax
import jax.numpy as jnp
from jax import lax
from jax.experimental import pallas as pl
from jax.experimental.pallas import tpu as pltpu

LANE = 128
_VMEM_LIMIT = 32 * 1024 * 1024


def _round_up(x, m):
    return (x + m - 1) // m * m


def _pad_last(a, target):
    return jnp.pad(a, [(0, 0)] * (a.ndim - 1) + [(0, target - a.shape[-1])])


def _pick_tile(m, cap=1024):
    t = cap
    while t >= 8:
        if t <= m and m % t == 0:
            return t
        t //= 2
    return m


# ----------------------------- Pallas kernels ------------------------------ #

def _conv_taps_kernel(x_ref, w_ref, scale_ref, shift_ref, y_ref, stats_ref,
                      *, K, Ho, Wo, fuse_act, pad_out):
    """Direct KxK stride-1 valid conv on one (pre-padded / folded) image.

    x_ref:     (1, Hin, Win, Cin_p)  VMEM-resident input tile
    w_ref:     (K*K, Cin_p, Cout_p)  per-tap weights
    scale/shift: (1, Cin_p)          affine applied to the input (fused BN of
                                     the previous layer; identity for conv1)
    y_ref:     (1, Ho+2, Wo+2, Cout_p) if pad_out else (Ho*Wo, Cout_p)
    stats_ref: (1, 2, Cout_p)        per-image [sum; sum of squares]
    """
    xt = x_ref[0]                                      # (Hin, Win, Cin_p)
    xt = xt * scale_ref[...] + shift_ref[...]          # identity for conv1
    if fuse_act:
        # BN1 + ReLU fused into the load; zero the spatial pad ring again
        # (BN of zero is not zero, so mask the interior explicitly).
        xt = jnp.maximum(xt, 0.0)
        hin, win = xt.shape[0], xt.shape[1]
        hi = lax.broadcasted_iota(jnp.int32, xt.shape, 0)
        wi = lax.broadcasted_iota(jnp.int32, xt.shape, 1)
        interior = (hi >= 1) & (hi <= hin - 2) & (wi >= 1) & (wi <= win - 2)
        xt = jnp.where(interior, xt, 0.0)

    cin = xt.shape[-1]
    cout = w_ref.shape[-1]
    acc = jnp.zeros((Ho * Wo, cout), jnp.float32)
    for dy in range(K):                                # K*K accumulated dots
        for dx in range(K):
            tap = xt[dy:dy + Ho, dx:dx + Wo, :].reshape(Ho * Wo, cin)
            acc = acc + jnp.dot(tap, w_ref[dy * K + dx],
                                preferred_element_type=jnp.float32)

    # BN batch-stats epilogue while the tile is still live (no extra HBM pass).
    s = jnp.sum(acc, axis=0, keepdims=True)
    sq = jnp.sum(acc * acc, axis=0, keepdims=True)
    stats_ref[0] = jnp.concatenate([s, sq], axis=0)

    if pad_out:
        # Write output directly in spatially padded layout (zero ring) so the
        # next conv needs no separate pad pass.
        y_ref[...] = jnp.zeros_like(y_ref)
        y_ref[0, 1:Ho + 1, 1:Wo + 1, :] = acc.reshape(Ho, Wo, cout)
    else:
        y_ref[...] = acc


def _bn_shortcut_relu_kernel(y_ref, xs_ref, w3_ref, b3_ref,
                             scale_ref, shift_ref, o_ref):
    # fused: 1x1-conv shortcut + BN2 (as scale/shift) + add + ReLU
    sc = jnp.dot(xs_ref[...], w3_ref[...],
                 preferred_element_type=jnp.float32) + b3_ref[...]
    o_ref[...] = jnp.maximum(y_ref[...] * scale_ref[...] + shift_ref[...] + sc,
                             0.0)


def _bn_identity_relu_kernel(y_ref, sc_ref, scale_ref, shift_ref, o_ref):
    o_ref[...] = jnp.maximum(
        y_ref[...] * scale_ref[...] + shift_ref[...] + sc_ref[...], 0.0)


# ------------------------------ Pallas wrappers ----------------------------- #

def conv_stats(x_img, w_taps, scale_in, shift_in, *, K, Ho, Wo,
               fuse_act, pad_out):
    """Direct conv over whole images (grid over batch) + BN partial stats."""
    # TODO(synk): for large spatial dims, additionally tile over output rows
    # (overlapping halo via manual DMA) instead of one image per grid step.
    N, Hin, Win, cin_p = x_img.shape
    cout_p = w_taps.shape[-1]
    if pad_out:
        y_shape = (N, Ho + 2, Wo + 2, cout_p)
        y_spec = pl.BlockSpec((1, Ho + 2, Wo + 2, cout_p),
                              lambda n: (n, 0, 0, 0))
    else:
        y_shape = (N * Ho * Wo, cout_p)
        y_spec = pl.BlockSpec((Ho * Wo, cout_p), lambda n: (n, 0))

    kernel = functools.partial(_conv_taps_kernel, K=K, Ho=Ho, Wo=Wo,
                               fuse_act=fuse_act, pad_out=pad_out)
    return pl.pallas_call(
        kernel,
        out_shape=(jax.ShapeDtypeStruct(y_shape, jnp.float32),
                   jax.ShapeDtypeStruct((N, 2, cout_p), jnp.float32)),
        grid=(N,),
        in_specs=[
            pl.BlockSpec((1, Hin, Win, cin_p), lambda n: (n, 0, 0, 0)),
            pl.BlockSpec((K * K, cin_p, cout_p), lambda n: (0, 0, 0)),
            pl.BlockSpec((1, cin_p), lambda n: (0, 0)),
            pl.BlockSpec((1, cin_p), lambda n: (0, 0)),
        ],
        out_specs=(y_spec, pl.BlockSpec((1, 2, cout_p), lambda n: (n, 0, 0))),
        compiler_params=pltpu.CompilerParams(
            dimension_semantics=("parallel",),
            vmem_limit_bytes=_VMEM_LIMIT),
    )(x_img, w_taps, scale_in, shift_in)


def bn_shortcut_relu(y2, xs, w3, b3, scale, shift):
    M, cp = y2.shape
    cin_p = xs.shape[1]
    tm = _pick_tile(M)
    row_y = pl.BlockSpec((tm, cp), lambda i: (i, 0))
    row_x = pl.BlockSpec((tm, cin_p), lambda i: (i, 0))
    chan = pl.BlockSpec((1, cp), lambda i: (0, 0))
    return pl.pallas_call(
        _bn_shortcut_relu_kernel,
        out_shape=jax.ShapeDtypeStruct((M, cp), jnp.float32),
        grid=(M // tm,),
        in_specs=[row_y, row_x,
                  pl.BlockSpec((cin_p, cp), lambda i: (0, 0)),
                  chan, chan, chan],
        out_specs=row_y,
        compiler_params=pltpu.CompilerParams(
            dimension_semantics=("parallel",),
            vmem_limit_bytes=_VMEM_LIMIT),
    )(y2, xs, w3, b3, scale, shift)


def bn_identity_relu(y2, sc, scale, shift):
    M, cp = y2.shape
    tm = _pick_tile(M)
    row = pl.BlockSpec((tm, cp), lambda i: (i, 0))
    chan = pl.BlockSpec((1, cp), lambda i: (0, 0))
    return pl.pallas_call(
        _bn_identity_relu_kernel,
        out_shape=jax.ShapeDtypeStruct((M, cp), jnp.float32),
        grid=(M // tm,),
        in_specs=[row, row, chan, chan],
        out_specs=row,
        compiler_params=pltpu.CompilerParams(
            dimension_semantics=("parallel",),
            vmem_limit_bytes=_VMEM_LIMIT),
    )(y2, sc, scale, shift)


# ----------------------- one-time parameter preparation --------------------- #

def prepare_params(params, *, in_channels, out_channels, stride, use_1x1conv):
    """Hoisted weight transposes / lane padding / stride fold (done once)."""
    cin, cout, s = in_channels, out_channels, stride
    cout_p = _round_up(cout, LANE)
    kf = (3 - 1) // s + 1                       # folded kernel size
    cin_f = s * s * cin                         # space-to-depth folded channels
    cin_fp = _round_up(cin_f, LANE)

    # conv1: scatter the 3x3 stride-s weight into a kf x kf stride-1 weight
    # over the space-to-depth folded input.  Folded channel = (pr*s+pc)*cin + c.
    w1t = jnp.transpose(params["w1"], (2, 3, 1, 0))     # (3,3,cin,cout)
    taps = []
    for a in range(kf):
        for b in range(kf):
            parts = []
            for pr in range(s):
                for pc in range(s):
                    dy, dx = a * s + pr, b * s + pc
                    if dy < 3 and dx < 3:
                        parts.append(w1t[dy, dx])
                    else:
                        parts.append(jnp.zeros((cin, cout), w1t.dtype))
            taps.append(jnp.concatenate(parts, axis=0))  # (s*s*cin, cout)
    w1f = jnp.stack(taps, axis=0)                        # (kf*kf, s*s*cin, cout)
    w1f = jnp.pad(w1f, ((0, 0), (0, cin_fp - cin_f), (0, cout_p - cout)))

    # conv2 (stride 1): (3,3,cout,cout) -> (9, cout_p, cout_p)
    w2t = jnp.transpose(params["w2"], (2, 3, 1, 0)).reshape(9, cout, cout)
    w2p = jnp.pad(w2t, ((0, 0), (0, cout_p - cout), (0, cout_p - cout)))

    # conv biases b1/b2 are intentionally dropped: they cancel exactly under
    # training-mode BatchNorm (mean subtraction removes them).
    prepped = {
        "w1f": w1f, "w2p": w2p,
        "g1": jnp.pad(params["g1"], (0, cout_p - cout)),
        "be1": jnp.pad(params["be1"], (0, cout_p - cout)),
        "g2": jnp.pad(params["g2"], (0, cout_p - cout)),
        "be2": jnp.pad(params["be2"], (0, cout_p - cout)),
        "kf": kf, "cin_fp": cin_fp, "cout_p": cout_p,
        "cin": cin, "cout": cout,
    }
    if use_1x1conv:
        cin_p = _round_up(cin, LANE)
        w3 = params["w3"].reshape(cout, cin).T            # (cin, cout)
        prepped["w3p"] = jnp.pad(w3, ((0, cin_p - cin), (0, cout_p - cout)))
        prepped["b3p"] = jnp.pad(params["b3"],
                                 (0, cout_p - cout)).reshape(1, cout_p)
        prepped["cin_p"] = cin_p
    return prepped


def _bn_scale_shift(stats, count, gamma_p, beta_p, eps):
    """Fold batch mean/var + affine into a per-channel scale/shift (tiny)."""
    s = jnp.sum(stats[:, 0, :], axis=0)
    sq = jnp.sum(stats[:, 1, :], axis=0)
    mean = s / count
    var = jnp.maximum(sq / count - mean * mean, 0.0)
    scale = gamma_p * lax.rsqrt(var + eps)
    shift = beta_p - mean * scale
    return scale.reshape(1, -1), shift.reshape(1, -1)


# ---------------------------------- forward --------------------------------- #

def residual_forward(x_nchw, prepped, *, stride, use_1x1conv, eps=1e-5):
    s = stride
    x = jnp.transpose(x_nchw, (0, 2, 3, 1)).astype(jnp.float32)   # NHWC
    N, H, W, cin = x.shape
    Ho = (H + 2 - 3) // s + 1
    Wo = (W + 2 - 3) // s + 1
    cout_p = prepped["cout_p"]
    kf = prepped["kf"]

    # conv1 input: spatial pad -> space-to-depth fold (stride) -> lane pad.
    xp = jnp.pad(x, ((0, 0), (1, 1), (1, 1), (0, 0)))
    Hp, Wp = H + 2, W + 2
    assert Hp % s == 0 and Wp % s == 0, "padded spatial dims must divide stride"
    Hf, Wf = Hp // s, Wp // s
    xf = xp.reshape(N, Hf, s, Wf, s, cin).transpose(0, 1, 3, 2, 4, 5)
    xf = _pad_last(xf.reshape(N, Hf, Wf, s * s * cin), prepped["cin_fp"])
    assert Hf - kf + 1 == Ho and Wf - kf + 1 == Wo

    ident_scale = jnp.ones((1, prepped["cin_fp"]), jnp.float32)
    ident_shift = jnp.zeros((1, prepped["cin_fp"]), jnp.float32)

    # conv1 (+ bn1 partial stats); output written in spatially padded layout.
    y1p, stats1 = conv_stats(xf, prepped["w1f"], ident_scale, ident_shift,
                             K=kf, Ho=Ho, Wo=Wo, fuse_act=False, pad_out=True)

    M = N * Ho * Wo
    scale1, shift1 = _bn_scale_shift(stats1, M, prepped["g1"], prepped["be1"],
                                     eps)

    # conv2 with BN1+ReLU fused into the input load (+ bn2 partial stats).
    y2, stats2 = conv_stats(y1p, prepped["w2p"], scale1, shift1,
                            K=3, Ho=Ho, Wo=Wo, fuse_act=True, pad_out=False)
    scale2, shift2 = _bn_scale_shift(stats2, M, prepped["g2"], prepped["be2"],
                                     eps)

    # shortcut + BN2 + add + ReLU, all in one kernel.
    if use_1x1conv:
        xs = x[:, ::s, ::s, :]
        xs = _pad_last(xs, prepped["cin_p"]).reshape(M, prepped["cin_p"])
        out = bn_shortcut_relu(y2, xs, prepped["w3p"], prepped["b3p"],
                               scale2, shift2)
    else:
        assert s == 1 and prepped["cin"] == prepped["cout"], \
            "identity shortcut requires stride=1 and in_channels==out_channels"
        sc = _pad_last(x, cout_p).reshape(M, cout_p)
        out = bn_identity_relu(y2, sc, scale2, shift2)

    out = out.reshape(N, Ho, Wo, cout_p)[:, :, :, :prepped["cout"]]
    return jnp.transpose(out, (0, 3, 1, 2))                      # NCHW


# ------------------------- pure-JAX reference check ------------------------- #

def _reference(x, p, *, stride, use_1x1conv, eps=1e-5):
    def conv(x, w, b, s, pad):
        y = lax.conv_general_dilated(
            x, w, (s, s), [(pad, pad), (pad, pad)],
            dimension_numbers=("NCHW", "OIHW", "NCHW"))
        return y + b[None, :, None, None]

    def bn(y, g, be):
        m = jnp.mean(y, axis=(0, 2, 3), keepdims=True)
        v = jnp.mean((y - m) ** 2, axis=(0, 2, 3), keepdims=True)
        return (y - m) / jnp.sqrt(v + eps) * g[None, :, None, None] \
               + be[None, :, None, None]

    y = jax.nn.relu(bn(conv(x, p["w1"], p["b1"], stride, 1), p["g1"], p["be1"]))
    y = bn(conv(y, p["w2"], p["b2"], 1, 1), p["g2"], p["be2"])
    sc = conv(x, p["w3"], p["b3"], stride, 0) if use_1x1conv else x
    return jax.nn.relu(y + sc)


# ----------------------------------- main ----------------------------------- #

if __name__ == "__main__":
    N, Cin, Cout, H, W = 2, 4, 8, 16, 16
    stride, use_1x1conv = 2, True

    key = jax.random.PRNGKey(0)
    kx, k1, kb1, k2, kb2, k3, kb3 = jax.random.split(key, 7)
    x = jax.random.normal(kx, (N, Cin, H, W), jnp.float32)
    params = {
        "w1": 0.2 * jax.random.normal(k1, (Cout, Cin, 3, 3), jnp.float32),
        "b1": 0.1 * jax.random.normal(kb1, (Cout,), jnp.float32),
        "w2": 0.2 * jax.random.normal(k2, (Cout, Cout, 3, 3), jnp.float32),
        "b2": 0.1 * jax.random.normal(kb2, (Cout,), jnp.float32),
        "w3": 0.2 * jax.random.normal(k3, (Cout, Cin, 1, 1), jnp.float32),
        "b3": 0.1 * jax.random.normal(kb3, (Cout,), jnp.float32),
        "g1": jnp.linspace(0.5, 1.5, Cout, dtype=jnp.float32),
        "be1": jnp.linspace(-0.2, 0.2, Cout, dtype=jnp.float32),
        "g2": jnp.linspace(1.5, 0.5, Cout, dtype=jnp.float32),
        "be2": jnp.linspace(0.2, -0.2, Cout, dtype=jnp.float32),
    }

    prepped = prepare_params(params, in_channels=Cin, out_channels=Cout,
                             stride=stride, use_1x1conv=use_1x1conv)
    out = jax.block_until_ready(
        residual_forward(x, prepped, stride=stride, use_1x1conv=use_1x1conv))
    ref = _reference(x, params, stride=stride, use_1x1conv=use_1x1conv)
    assert out.shape == ref.shape, (out.shape, ref.shape)
    err = float(jnp.abs(out - ref).max())
    assert jnp.allclose(out, ref, atol=1e-4, rtol=1e-4), err
    print("KERNEL_OK")
</pallas_src>

<mosaic_0001>
module attributes {stable_mosaic.version = 11 : i64} {
  func.func @_conv_taps_kernel(%arg0: i32, %arg1: memref<1x9x9x128xf32, #tpu.memory_space<vmem>>, %arg2: memref<4x128x128xf32, #tpu.memory_space<vmem>>, %arg3: memref<1x128xf32, #tpu.memory_space<vmem>>, %arg4: memref<1x128xf32, #tpu.memory_space<vmem>>, %arg5: memref<1x10x10x128xf32, #tpu.memory_space<vmem>>, %arg6: memref<1x2x128xf32, #tpu.memory_space<vmem>>) attributes {dimension_semantics = [#tpu.dimension_semantics<parallel>], iteration_bounds = array<i64: 2>, scalar_prefetch = 0 : i64, scratch_operands = 0 : i64, tpu.core_type = #tpu.core_type<tc>, window_params = [{transform_indices = @transform_0, window_bounds = array<i64: 1, 9, 9, 128>}, {pipeline_mode = #tpu.pipeline_mode<synchronous>, transform_indices = @transform_1, window_bounds = array<i64: 4, 128, 128>}, {pipeline_mode = #tpu.pipeline_mode<synchronous>, transform_indices = @transform_2, window_bounds = array<i64: 1, 128>}, {pipeline_mode = #tpu.pipeline_mode<synchronous>, transform_indices = @transform_3, window_bounds = array<i64: 1, 128>}, {transform_indices = @transform_4, window_bounds = array<i64: 1, 10, 10, 128>}, {transform_indices = @transform_5, window_bounds = array<i64: 1, 2, 128>}]} {
    %c0 = arith.constant 0 : index
    %c0_0 = arith.constant 0 : index
    %c0_1 = arith.constant 0 : index
    %c0_2 = arith.constant 0 : index
    %0 = vector.load %arg1[%c0, %c0_0, %c0_1, %c0_2] : memref<1x9x9x128xf32, #tpu.memory_space<vmem>>, vector<1x9x9x128xf32>
    %1 = vector.shape_cast %0 : vector<1x9x9x128xf32> to vector<9x9x128xf32>
    %c0_3 = arith.constant 0 : index
    %c0_4 = arith.constant 0 : index
    %2 = vector.load %arg3[%c0_3, %c0_4] : memref<1x128xf32, #tpu.memory_space<vmem>>, vector<1x128xf32>
    %3 = vector.shape_cast %2 : vector<1x128xf32> to vector<1x1x128xf32>
    %4 = vector.broadcast %3 : vector<1x1x128xf32> to vector<9x9x128xf32>
    %5 = arith.mulf %1, %4 : vector<9x9x128xf32>
    %c0_5 = arith.constant 0 : index
    %c0_6 = arith.constant 0 : index
    %6 = vector.load %arg4[%c0_5, %c0_6] : memref<1x128xf32, #tpu.memory_space<vmem>>, vector<1x128xf32>
    %7 = vector.shape_cast %6 : vector<1x128xf32> to vector<1x1x128xf32>
    %8 = vector.broadcast %7 : vector<1x1x128xf32> to vector<9x9x128xf32>
    %9 = arith.addf %5, %8 : vector<9x9x128xf32>
    %cst = arith.constant 0.000000e+00 : f32
    %10 = vector.broadcast %cst : f32 to vector<64x128xf32>
    %11 = vector.extract_strided_slice %9 {offsets = [0, 0, 0], sizes = [8, 8, 128], strides = [1, 1, 1]} : vector<9x9x128xf32> to vector<8x8x128xf32>
    %12 = vector.shape_cast %11 : vector<8x8x128xf32> to vector<64x128xf32>
    %c0_7 = arith.constant 0 : index
    %c0_8 = arith.constant 0 : index
    %c0_9 = arith.constant 0 : index
    %13 = vector.load %arg2[%c0_7, %c0_8, %c0_9] : memref<4x128x128xf32, #tpu.memory_space<vmem>>, vector<1x128x128xf32>
    %14 = vector.shape_cast %13 : vector<1x128x128xf32> to vector<128x128xf32>
    %cst_10 = arith.constant dense<0.000000e+00> : vector<64x128xf32>
    %15 = tpu.matmul %12, %14, %cst_10 {dimension_numbers = #tpu.dot_dimension_numbers<[1], [0], [0], [1], [0, 0, 1, 1], [], []>} : vector<64x128xf32>, vector<128x128xf32>, vector<64x128xf32> -> vector<64x128xf32>
    %16 = arith.addf %10, %15 : vector<64x128xf32>
    %17 = vector.extract_strided_slice %9 {offsets = [0, 1, 0], sizes = [8, 8, 128], strides = [1, 1, 1]} : vector<9x9x128xf32> to vector<8x8x128xf32>
    %18 = vector.shape_cast %17 : vector<8x8x128xf32> to vector<64x128xf32>
    %c1 = arith.constant 1 : index
    %c0_11 = arith.constant 0 : index
    %c0_12 = arith.constant 0 : index
    %19 = vector.load %arg2[%c1, %c0_11, %c0_12] : memref<4x128x128xf32, #tpu.memory_space<vmem>>, vector<1x128x128xf32>
    %20 = vector.shape_cast %19 : vector<1x128x128xf32> to vector<128x128xf32>
    %cst_13 = arith.constant dense<0.000000e+00> : vector<64x128xf32>
    %21 = tpu.matmul %18, %20, %cst_13 {dimension_numbers = #tpu.dot_dimension_numbers<[1], [0], [0], [1], [0, 0, 1, 1], [], []>} : vector<64x128xf32>, vector<128x128xf32>, vector<64x128xf32> -> vector<64x128xf32>
    %22 = arith.addf %16, %21 : vector<64x128xf32>
    %23 = vector.extract_strided_slice %9 {offsets = [1, 0, 0], sizes = [8, 8, 128], strides = [1, 1, 1]} : vector<9x9x128xf32> to vector<8x8x128xf32>
    %24 = vector.shape_cast %23 : vector<8x8x128xf32> to vector<64x128xf32>
    %c2 = arith.constant 2 : index
    %c0_14 = arith.constant 0 : index
    %c0_15 = arith.constant 0 : index
    %25 = vector.load %arg2[%c2, %c0_14, %c0_15] : memref<4x128x128xf32, #tpu.memory_space<vmem>>, vector<1x128x128xf32>
    %26 = vector.shape_cast %25 : vector<1x128x128xf32> to vector<128x128xf32>
    %cst_16 = arith.constant dense<0.000000e+00> : vector<64x128xf32>
    %27 = tpu.matmul %24, %26, %cst_16 {dimension_numbers = #tpu.dot_dimension_numbers<[1], [0], [0], [1], [0, 0, 1, 1], [], []>} : vector<64x128xf32>, vector<128x128xf32>, vector<64x128xf32> -> vector<64x128xf32>
    %28 = arith.addf %22, %27 : vector<64x128xf32>
    %29 = vector.extract_strided_slice %9 {offsets = [1, 1, 0], sizes = [8, 8, 128], strides = [1, 1, 1]} : vector<9x9x128xf32> to vector<8x8x128xf32>
    %30 = vector.shape_cast %29 : vector<8x8x128xf32> to vector<64x128xf32>
    %c3 = arith.constant 3 : index
    %c0_17 = arith.constant 0 : index
    %c0_18 = arith.constant 0 : index
    %31 = vector.load %arg2[%c3, %c0_17, %c0_18] : memref<4x128x128xf32, #tpu.memory_space<vmem>>, vector<1x128x128xf32>
    %32 = vector.shape_cast %31 : vector<1x128x128xf32> to vector<128x128xf32>
    %cst_19 = arith.constant dense<0.000000e+00> : vector<64x128xf32>
    %33 = tpu.matmul %30, %32, %cst_19 {dimension_numbers = #tpu.dot_dimension_numbers<[1], [0], [0], [1], [0, 0, 1, 1], [], []>} : vector<64x128xf32>, vector<128x128xf32>, vector<64x128xf32> -> vector<64x128xf32>
    %34 = arith.addf %28, %33 : vector<64x128xf32>
    %cst_20 = arith.constant dense<0.000000e+00> : vector<128xf32>
    %35 = vector.multi_reduction <add>, %34, %cst_20 [0] : vector<64x128xf32> to vector<128xf32>
    %36 = vector.shape_cast %35 : vector<128xf32> to vector<1x128xf32>
    %37 = arith.mulf %34, %34 : vector<64x128xf32>
    %cst_21 = arith.constant dense<0.000000e+00> : vector<128xf32>
    %38 = vector.multi_reduction <add>, %37, %cst_21 [0] : vector<64x128xf32> to vector<128xf32>
    %39 = vector.shape_cast %38 : vector<128xf32> to vector<1x128xf32>
    %40 = tpu.concatenate %36, %39 in 0 : vector<1x128xf32>, vector<1x128xf32> -> vector<2x128xf32>
    %c0_22 = arith.constant 0 : index
    %c0_23 = arith.constant 0 : index
    %c0_24 = arith.constant 0 : index
    %41 = vector.load %arg6[%c0_22, %c0_23, %c0_24] : memref<1x2x128xf32, #tpu.memory_space<vmem>>, vector<1x2x128xf32>
    %42 = vector.shape_cast %41 : vector<1x2x128xf32> to vector<2x128xf32>
    %43 = vector.shape_cast %40 : vector<2x128xf32> to vector<1x2x128xf32>
    tpu.vector_store %arg6[%c0_22, %c0_23, %c0_24], %43 {strides = array<i32>} : memref<1x2x128xf32, #tpu.memory_space<vmem>>, vector<1x2x128xf32>,
    %cst_25 = arith.constant 0.000000e+00 : f32
    %44 = vector.broadcast %cst_25 : f32 to vector<1x10x10x128xf32>
    %c0_26 = arith.constant 0 : index
    %c0_27 = arith.constant 0 : index
    %c0_28 = arith.constant 0 : index
    %c0_29 = arith.constant 0 : index
    %45 = vector.load %arg5[%c0_26, %c0_27, %c0_28, %c0_29] : memref<1x10x10x128xf32, #tpu.memory_space<vmem>>, vector<1x10x10x128xf32>
    tpu.vector_store %arg5[%c0_26, %c0_27, %c0_28, %c0_29], %44 {strides = array<i32>} : memref<1x10x10x128xf32, #tpu.memory_space<vmem>>, vector<1x10x10x128xf32>,
    %46 = vector.shape_cast %34 : vector<64x128xf32> to vector<8x8x128xf32>
    %c0_30 = arith.constant 0 : index
    %c1_31 = arith.constant 1 : index
    %c1_32 = arith.constant 1 : index
    %c0_33 = arith.constant 0 : index
    %47 = vector.load %arg5[%c0_30, %c1_31, %c1_32, %c0_33] : memref<1x10x10x128xf32, #tpu.memory_space<vmem>>, vector<1x8x8x128xf32>
    %48 = vector.shape_cast %47 : vector<1x8x8x128xf32> to vector<8x8x128xf32>
    %49 = vector.shape_cast %46 : vector<8x8x128xf32> to vector<1x8x8x128xf32>
    tpu.vector_store %arg5[%c0_30, %c1_31, %c1_32, %c0_33], %49 {strides = array<i32>} : memref<1x10x10x128xf32, #tpu.memory_space<vmem>>, vector<1x8x8x128xf32>,
    return
  }
  func.func @transform_0(%arg0: i32) -> (i32, i32, i32, i32) {
    %c0_i32 = arith.constant 0 : i32
    %c0_i32_0 = arith.constant 0 : i32
    %c0_i32_1 = arith.constant 0 : i32
    %c0_i32_2 = arith.constant 0 : i32
    return %arg0, %c0_i32, %c0_i32_0, %c0_i32_1 : i32, i32, i32, i32
  }
  func.func @transform_1(%arg0: i32) -> (i32, i32, i32) {
    %c0_i32 = arith.constant 0 : i32
    %c0_i32_0 = arith.constant 0 : i32
    %c0_i32_1 = arith.constant 0 : i32
    %c0_i32_2 = arith.constant 0 : i32
    return %c0_i32, %c0_i32_0, %c0_i32_1 : i32, i32, i32
  }
  func.func @transform_2(%arg0: i32) -> (i32, i32) {
    %c0_i32 = arith.constant 0 : i32
    %c0_i32_0 = arith.constant 0 : i32
    %c0_i32_1 = arith.constant 0 : i32
    return %c0_i32, %c0_i32_0 : i32, i32
  }
  func.func @transform_3(%arg0: i32) -> (i32, i32) {
    %c0_i32 = arith.constant 0 : i32
    %c0_i32_0 = arith.constant 0 : i32
    %c0_i32_1 = arith.constant 0 : i32
    return %c0_i32, %c0_i32_0 : i32, i32
  }
  func.func @transform_4(%arg0: i32) -> (i32, i32, i32, i32) {
    %c0_i32 = arith.constant 0 : i32
    %c0_i32_0 = arith.constant 0 : i32
    %c0_i32_1 = arith.constant 0 : i32
    %c0_i32_2 = arith.constant 0 : i32
    return %arg0, %c0_i32, %c0_i32_0, %c0_i32_1 : i32, i32, i32, i32
  }
  func.func @transform_5(%arg0: i32) -> (i32, i32, i32) {
    %c0_i32 = arith.constant 0 : i32
    %c0_i32_0 = arith.constant 0 : i32
    %c0_i32_1 = arith.constant 0 : i32
    return %arg0, %c0_i32, %c0_i32_0 : i32, i32, i32
  }
}

</mosaic_0001>

<bundles_post_ra>
// kernel: tpu_custom_call.1
= control target key start
LH: loop header
LB: loop body
LE: loop exit
PB: predicated region body
PF: predicated region fallthrough
CT: control target
= control target key end

     0   :  { %11 = vsyncpa [#allocation3], 0  ;;  %s2012_s0 = inlined_call_operand.vmem [shape: f32[2,9,9,128], index: 0, kind: input, shape index: {}]   ;;  %s2013_s1 = inlined_call_operand.hbm [shape: f32[4,128,128], index: 1, kind: input, shape index: {}]   ;;  %s2014_s2 = inlined_call_operand.vmem [shape: f32[1,128], index: 2, kind: input, shape index: {}]   ;;  %s2015_s3 = inlined_call_operand.vmem [shape: f32[1,128], index: 3, kind: input, shape index: {}]   ;;  %s2016_s4 = inlined_call_operand.vmem [shape: f32[2,10,10,128], index: 4, kind: output, shape index: {0}]   ;;  %s2017_s5 = inlined_call_operand.hbm [shape: f32[2,2,128], index: 5, kind: output, shape index: {1}]  }
   0x1   :  { %12 = vsyncpa [#allocation4], 0 }
   0x2   :  { %14 = vsyncpa [#allocation4 + $0x1], 0  ;;  %s1694_s18 = smov 0   ;;  %s1696_s19 = smov 0  }
   0x3   :  { %s1698_s20 = smov 0   ;;  %s1700_s21 = smov 0  }
   0x4 LB: > { %s1715_s22 = sadd.s32 4294967295, %s1657_s21   ;;  %s1061_s23 = sadd.s32 4294967294, %s1657_s21   ;;  %s1657_s21 = sphi %s1700_s21, %s2033_s21   ;;  %s1653_s20 = sphi %s1698_s20, %s2032_s20   ;;  %s1649_s19 = sphi %s1696_s19, %s2031_s19   ;;  %s1645_s18 = sphi %s1694_s18, %s2030_s18  }
   0x5   : > { %s1719_s24 = sadd.s32 1, %s1657_s21   ;;  %s142_s25 = sadd.s32 1, %s1653_s20 }
   0x6   : > { %s139_s26 = ssub.s32 %s1657_s21, %s1719_s24  ;;  %p152_p0 = scmp.ne.s32.totalorder %s1653_s20, %s1649_s19 }
   0x7   : > { %p140_p1 = scmp.eq.s32.totalorder %s139_s26, 0  ;;  %p153_p2 = scmp.eq.s32.totalorder %s1715_s22, 1 }
   0x8   : > { %p158_p3 = scmp.ne.s32.totalorder %s1649_s19, %s1645_s18  ;;  %p159_p4 = scmp.eq.s32.totalorder %s1061_s23, 1 }
   0x9   : > { %s1730_s27 = scalar_select %p140_p1, %s1653_s20, %s142_s25  }
   0xa   : > { %p1732_p5 = por %p153_p2, %p152_p0  ;;  %p1736_p6 = por %p159_p4, %p158_p3 }
   0xb   : > { %p1062_p7 = scmp.ge.s32.totalorder %s1657_s21, 1  ;;  %p166_p8 = scmp.lt.s32.totalorder %s1657_s21, 3 }
   0xc   : > { %s2021_s28 = scalar_select %p1732_p5, 1, 0 }
   0xd   : > { %s2022_s29 = scalar_select %p1736_p6, 1, 0 }
   0xe   : > { %p2018_p9 = scmp.eq.s32.totalorder %s1715_s22, 0  ;;  %p1743_p10 = pnand %p1062_p7, %p166_p8 }
   0xf   : > { %s1659_s6 = smov [#allocation2]   ;;  %s1563_s11 = scalar_lea.hbm %s2013_s1, 8192 }
  0x10   : > { %s2023_s30 = scalar_select %p1743_p10, 1, 0 }
  0x11   : > { %s178_s7 = sshll.u32 %s1659_s6, 4  ;;  %p1516_p11 = pneg %p1743_p10  ;;  %s179_s7 = int_to_ptr.vmem [resolvable:$true] %s178_s7 }
  0x12   : > { %p1564_p13 = scmp.ne.s32.totalorder %s2013_s1, %s1563_s11  ;;  %p1570_p3 = scmp.lt.u32.totalorder %s1563_s11, %s2013_s1 }
  0x13   : > { %p1751_p12 = pnand %p2018_p9, %p1516_p11 }
  0x15   : > { %p1565_p0 = pneg %p1751_p12 }
  0x17   : > { %p1566_p1 = pnand %p1565_p0, %p1564_p13 }
  0x19   : > { %p1567_p2 = pneg %p1566_p1 }
  0x1b   : > { %p1572_p4 = pnand %p1570_p3, %p1567_p2 }
  0x1d   : > { %1575 = shalt.err (!%p1572_p4)
}
  0x1e   : > { %s1576_s16 = scalar_lea.vmem %s179_s7, 8192  ;;  %p1584_p9 = scmp.lt.s32.totalorder %s179_s7, %s179_s7 }
  0x1f   : > { %p1577_p7 = scmp.ne.s32.totalorder %s179_s7, %s1576_s16  ;;  %p1585_p6 = scmp.lt.s32.totalorder %s1576_s16, %s1576_s16 }
  0x21   : > { %p1579_p8 = pnand %p1577_p7, %p1565_p0  ;;  %p1586_p5 = por %p1585_p6, %p1584_p9 }
  0x23   : > { %p1580_p11 = pneg %p1579_p8 }
  0x25   : > { %p1587_p10 = pnand %p1586_p5, %p1580_p11 }
  0x27   : > { %1590 = shalt.err (!%p1587_p10)
}
  0x28   : > { %s1660_s17 = smov 128   ;;  %s1661_s23 = smov 8  }
  0x29   : > { %1519 = dma.hbm_to_vmem [thread:$0]  (!%p1751_p12), %s2013_s1, 8192, %s179_s7, [#allocation3], %s1660_s17, %s1660_s17, %s1661_s23  }
  0x2a   : > { %p2025_p13 = scmp.ne.s32.totalorder %s2023_s30, 0 }
  0x2b   : > { %p2026_p1 = scmp.eq.s32.totalorder (!%p2025_p13), %s1715_s22, 0 }
  0x2c   : > { %208 = sbr.rel (%p2025_p13) target bundleno = 380 (0x17c), region = 36 }
  0x33   : > { %1636 = dma.done.wait (%p2026_p1), [#allocation3], 8192   ;;  %p2027_p0 = pmov %p2026_p1 }
  0x34   : > { %p241_p5 = scmp.lt.s32.totalorder %s1715_s22, 1  ;;  %v385_v0 = vld [vmem:[#allocation2 + $0x80] sm:$0xff]  ;;  %v386_v1 = vld [vmem:[#allocation2 + $0x88] sm:$0xff]  ;;  %v387_v5 = vld [vmem:[#allocation2 + $0x90] sm:$0xff]  ;;  %vm351_vm0 = vcmask 1046528   ;;  %s238_s23 = sand.u32 1, %s1649_s19  }
  0x35   : > { %1638 = vsyncadd (%p2027_p0), [#allocation3], 4294959104  ;;  %v612_v2 = vld [vmem:[#allocation2 + $0x100] sm:$0xff]  ;;  %v1356_v3 = vpack.c.bf16 %v386_v1, %v385_v0  ;;  %v613_v4 = vld [vmem:[#allocation2 + $0x108] sm:$0xff]  ;;  %s1067_s25 = sshll.u32 %s238_s23, 1  ;;  %s1081_s26 = sshll.u32 %s1715_s22, 5 }
  0x36   : > { %s1779_s6 = scalar_select %p241_p5, %s1715_s22, 1  ;;  %v388_v6 = vld [vmem:[#allocation2 + $0x98] sm:$0xff]  ;;  %v1420_v7 = vpack.c.bf16 %v613_v4, %v612_v2  ;;  %v614_v9 = vld [vmem:[#allocation2 + $0x110] sm:$0xff]  ;;  %v389_v11 = vld [vmem:[#allocation2 + $0xa0] sm:$0xff]  ;;  %vm911_vm1 = vcmask 1040384  }
  0x37   : > { %v1360_v8 = vpack.c.bf16 %v388_v6, %v387_v5  ;;  %v615_v10 = vld [vmem:[#allocation2 + $0x118] sm:$0xff]  ;;  %1357 = vmatprep.subr.bf16.mxu1 %v1356_v3  ;;  %v390_v13 = vld [vmem:[#allocation2 + $0xa8] sm:$0xff]  ;;  %v616_v14 = vld [vmem:[#allocation2 + $0x120] sm:$0xff]  ;;  %s949_s10 = scalar_lea.sflag [#allocation4], %s238_s23  ;;  %p2028_p9 = scmp.ne.s32.totalorder %s2021_s28, 0 }
  0x38   : > { %v1424_v12 = vpack.c.bf16 %v615_v10, %v614_v9  ;;  %v617_v15 = vld [vmem:[#allocation2 + $0x128] sm:$0xff]  ;;  %s1508_s30 = smul.u32 144, %s1779_s6  ;;  %1421 = vmatprep.subr.bf16.mxu0 %v1420_v7  ;;  %1359 = vmatpush3.bf16.msra.mxu1 %v1356_v3  ;;  %v1364_v16 = vpack.c.bf16 %v390_v13, %v389_v11  ;;  %v391_v18 = vld [vmem:[#allocation2 + $0xb0] sm:$0xff]  ;;  %v392_v19 = vld [vmem:[#allocation2 + $0xb8] sm:$0xff]  ;;  %s1663_s22 = smov [#allocation5]  }
  0x39   : > { %1423 = vmatpush3.bf16.msra.mxu0 %v1420_v7  ;;  %1361 = vmatprep.subr.bf16.mxu1 %v1360_v8  ;;  %v1428_v17 = vpack.c.bf16 %v617_v15, %v616_v14  ;;  %v618_v20 = vld [vmem:[#allocation2 + $0x130] sm:$0xff]  ;;  %v619_v21 = vld [vmem:[#allocation2 + $0x138] sm:$0xff]  ;;  %v1368_v22 = vpack.c.bf16 %v392_v19, %v391_v18  ;;  %v393_v23 = vld [vmem:[#allocation2 + $0xc0] sm:$0xff]  ;;  %s1509_s14 = smul.u32 160, %s1779_s6  ;;  %s240_s6 = scalar_lea.vmem [#allocation5], %s1067_s25 }
  0x3a   : > { %1425 = vmatprep.subr.bf16.mxu0 %v1424_v12  ;;  %s1785_s9 = scalar_lea.vmem %s2012_s0, %s1508_s30  ;;  %v394_v24 = vld [vmem:[#allocation2 + $0xc8] sm:$0xff]  ;;  %v1432_v25 = vpack.c.bf16 %v619_v21, %v618_v20  ;;  %v620_v26 = vld [vmem:[#allocation2 + $0x140] sm:$0xff]  ;;  %v395_v38 = vld [vmem:[#allocation2 + $0xd0] sm:$0xff]  ;;  %s965_s30 = sshll.u32 %s240_s6, 4  ;;  %s1972_s30 = int_to_ptr.vmem [resolvable:$true] %s965_s30 }
  0x3b   : > { %v621_v27 = vld [vmem:[#allocation2 + $0x148] sm:$0xff]  ;;  %v251_v28 = vld [vmem:[%s1785_s9] sm:$0xff]  ;;  %v253_v34 = vld [vmem:[%s1785_s9 + $0x10] sm:$0xff]  ;;  %v1372_v35 = vpack.c.bf16 %v394_v24, %v393_v23  ;;  %s1935_s17 = scalar_lea.vmem %s2016_s4, %s1509_s14  ;;  %s1591_s11 = scalar_lea.vmem %s1972_s30, 32 }
  0x3c   : > { %1363 = vmatpush3.bf16.msra.mxu1 %v1360_v8  ;;  %v252_v29 = vld [vmem:[%s1785_s9 + $0x8] sm:$0x1]  ;;  %v1792_v30 = vld [vmem:[%s2014_s2] ss:$0 sm:$0xff]  ;;  %v1436_v37 = vpack.c.bf16 %v621_v27, %v620_v26  ;;  %v396_v39 = vld [vmem:[#allocation2 + $0xd8] sm:$0xff]  ;;  %p1592_p6 = scmp.ne.s32.totalorder %s1972_s30, %s1591_s11  ;;  %s1595_s12 = sshll.u32 %s1663_s22, 4  ;;  %s1596_s12 = int_to_ptr.vmem [resolvable:$false] %s1595_s12 }
  0x3d   : > { %1427 = vmatpush3.bf16.msra.mxu0 %v1424_v12  ;;  %1365 = vmatprep.subr.bf16.mxu1 %v1364_v16  ;;  %v1797_v31 = vld [vmem:[%s2015_s3] ss:$0 sm:$0xff]  ;;  %v276_v32 = vmul.f32 %v1792_v30, %v251_v28  ;;  %v277_v33 = vmul.f32 %v1792_v30, %v252_v29  ;;  %v278_v36 = vmul.f32 %v1792_v30, %v253_v34  ;;  %v622_v42 = vld [vmem:[#allocation2 + $0x150] sm:$0xff]  ;;  %v623_v43 = vld [vmem:[#allocation2 + $0x158] sm:$0xff]  ;;  %s1597_s13 = scalar_lea.vmem %s1596_s12, 64  ;;  %p1598_p2 = scmp.lt.s32.totalorder %s1972_s30, %s1596_s12 }
  0x3e   : > { %1429 = vmatprep.subr.bf16.mxu0 %v1428_v17  ;;  %v254_v44 = vld [vmem:[%s1785_s9 + $0x18] sm:$0x1]  ;;  %v1376_v48 = vpack.c.bf16 %v396_v39, %v395_v38  ;;  %v1440_v49 = vpack.c.bf16 %v623_v43, %v622_v42  ;;  %v397_v50 = vld [vmem:[#allocation2 + $0xe0] sm:$0xff]  ;;  %v398_v51 = vld [vmem:[#allocation2 + $0xe8] sm:$0xff]  ;;  %p1593_p10 = pnand %p1592_p6, %p2028_p9  ;;  %p1599_p3 = scmp.lt.s32.totalorder %s1597_s13, %s1591_s11 }
  0x3f   : > { %v1804_v40 = vadd.f32 %v1797_v31, %v276_v32  ;;  %v302_v41 = vadd.f32 %v1797_v31, %v277_v33  ;;  %v1810_v47 = vadd.f32 %v1797_v31, %v278_v36  ;;  %v279_v53 = vmul.f32 %v1792_v30, %v254_v44  ;;  %v624_v54 = vld [vmem:[#allocation2 + $0x160] sm:$0xff]  ;;  %v625_v55 = vld [vmem:[#allocation2 + $0x168] sm:$0xff]  ;;  %v257_v58 = vld [vmem:[%s1785_s9 + $0x30] sm:$0xff] }
  0x40   : > { %1367 = vmatpush3.bf16.msra.mxu1 %v1364_v16  ;;  %v256_v56 = vld [vmem:[%s1785_s9 + $0x28] sm:$0x1]  ;;  %v255_v57 = vld [vmem:[%s1785_s9 + $0x20] sm:$0xff]  ;;  %v258_v59 = vld [vmem:[%s1785_s9 + $0x38] sm:$0x1]  ;;  %v1380_v60 = vpack.c.bf16 %v398_v51, %v397_v50  ;;  %v1444_v62 = vpack.c.bf16 %v625_v55, %v624_v54  ;;  %v282_v4 = vmul.f32 %v1792_v30, %v257_v58  ;;  %p1594_p12 = pneg %p1593_p10  ;;  %p1600_p4 = por %p1599_p3, %p1598_p2 }
  0x41   : > { %1431 = vmatpush3.bf16.msra.mxu0 %v1428_v17  ;;  %1369 = vmatprep.subr.bf16.mxu1 %v1368_v22  ;;  %v352_v45 = vrot.slane %v1804_v40, 1  ;;  %v353_v46 = vrot.slane %v302_v41, 1  ;;  %v399_v61 = vld [vmem:[#allocation2 + $0xf0] sm:$0xff]  ;;  %v400_v63 = vld [vmem:[#allocation2 + $0xf8] sm:$0xff]  ;;  %v304_v2 = vadd.f32 %v1797_v31, %v279_v53  ;;  %v281_v3 = vmul.f32 %v1792_v30, %v256_v56  ;;  %v259_v7 = vld [vmem:[%s1785_s9 + $0x40] sm:$0xff] }
  0x42   : > { %1433 = vmatprep.subr.bf16.mxu0 %v1432_v25  ;;  %1300 = vmatprep.mubr.f32.mxu0 %v1810_v47  ;;  %v626_v0 = vld [vmem:[#allocation2 + $0x170] sm:$0xff]  ;;  %v627_v1 = vld [vmem:[#allocation2 + $0x178] sm:$0xff]  ;;  %v280_v5 = vmul.f32 %v1792_v30, %v255_v57  ;;  %v283_v6 = vmul.f32 %v1792_v30, %v258_v59  ;;  %v260_v8 = vld [vmem:[%s1785_s9 + $0x48] sm:$0x1]  ;;  %v1384_v9 = vpack.c.bf16 %v400_v63, %v399_v61  ;;  %v355_v12 = vrot.slane %v1810_v47, 1  ;;  %p1601_p7 = pnand %p1600_p4, %p1594_p12 }
  0x43   : > { %v354_v52 = vsel %vm351_vm0, %v352_v45, %v353_v46  ;;  %v1448_v10 = vpack.c.bf16 %v627_v1, %v626_v0  ;;  %v319_v11 = vld [vmem:[#allocation2] sm:$0xff]  ;;  %v261_v13 = vld [vmem:[%s1785_s9 + $0x50] sm:$0xff]  ;;  %v262_v14 = vld [vmem:[%s1785_s9 + $0x58] sm:$0x1]  ;;  %v356_v18 = vrot.slane %v304_v2, 1  ;;  %v306_v19 = vadd.f32 %v1797_v31, %v281_v3 }
  0x44   : > { %1371 = vmatpush3.bf16.msra.mxu1 %v1368_v22  ;;  %1212 = vmatprep.mubr.f32.mxu1 %v354_v52  ;;  %v320_v15 = vld [vmem:[#allocation2 + $0x8] sm:$0xff]  ;;  %v748_v16 = vld [vmem:[#allocation2 + $0x180] sm:$0xff]  ;;  %v1831_v20 = vadd.f32 %v1797_v31, %v282_v4  ;;  %v284_v21 = vmul.f32 %v1792_v30, %v259_v7  ;;  %v1835_v22 = vadd.f32 %v1797_v31, %v280_v5  ;;  %v265_v34 = vld [vmem:[%s1785_s9 + $0x70] sm:$0xff] }
  0x45   : > { %1435 = vmatpush3.bf16.msra.mxu0 %v1432_v25  ;;  %1373 = vmatprep.subr.bf16.mxu1 %v1372_v35  ;;  %v749_v17 = vld [vmem:[#allocation2 + $0x188] sm:$0xff]  ;;  %v308_v23 = vadd.f32 %v1797_v31, %v283_v6  ;;  %v285_v24 = vmul.f32 %v1792_v30, %v260_v8  ;;  %v286_v25 = vmul.f32 %v1792_v30, %v261_v13  ;;  %v263_v27 = vld [vmem:[%s1785_s9 + $0x60] sm:$0xff]  ;;  %v322_v38 = vld [vmem:[#allocation2 + $0x18] sm:$0xff]  ;;  %v359_v39 = vrot.slane %v306_v19, 1 }
  0x46   : > { %1437 = vmatprep.subr.bf16.mxu0 %v1436_v37  ;;  %v287_v26 = vmul.f32 %v1792_v30, %v262_v14  ;;  %v264_v28 = vld [vmem:[%s1785_s9 + $0x68] sm:$0x1]  ;;  %v1388_v29 = vpack.c.bf16 %v320_v15, %v319_v11  ;;  %v1452_v32 = vpack.c.bf16 %v749_v17, %v748_v16  ;;  %v358_v33 = vrot.slane %v1835_v22, 1  ;;  %v750_v43 = vld [vmem:[#allocation2 + $0x190] sm:$0xff]  ;;  %v751_v44 = vld [vmem:[#allocation2 + $0x198] sm:$0xff] }
  0x47   : > { %v1847_v36 = vsel %vm351_vm0, %v355_v12, %v356_v18  ;;  %v361_v41 = vrot.slane %v1831_v20, 1  ;;  %v1851_v42 = vadd.f32 %v1797_v31, %v284_v21  ;;  %v362_v45 = vrot.slane %v308_v23, 1  ;;  %v323_v56 = vld [vmem:[#allocation2 + $0x20] sm:$0xff]  ;;  %v324_v57 = vld [vmem:[#allocation2 + $0x28] sm:$0xff]  ;;  %v754_v11 = vld [vmem:[#allocation2 + $0x1b0] sm:$0xff] }
  0x48   : > { %1375 = vmatpush3.bf16.msra.mxu1 %v1372_v35  ;;  %v266_v35 = vld [vmem:[%s1785_s9 + $0x78] sm:$0x1]  ;;  %v310_v46 = vadd.f32 %v1797_v31, %v285_v24  ;;  %v1857_v50 = vadd.f32 %v1797_v31, %v286_v25  ;;  %v312_v51 = vadd.f32 %v1797_v31, %v287_v26  ;;  %v290_v52 = vmul.f32 %v1792_v30, %v265_v34  ;;  %v753_v61 = vld [vmem:[#allocation2 + $0x1a8] sm:$0xff]  ;;  %v267_v7 = vld [vmem:[%s1785_s9 + $0x80] sm:$0xff] }
  0x49   : > { %1439 = vmatpush3.bf16.msra.mxu0 %v1436_v37  ;;  %1377 = vmatprep.subr.bf16.mxu1 %v1376_v48  ;;  %v321_v37 = vld [vmem:[#allocation2 + $0x10] sm:$0xff]  ;;  %v291_v53 = vmul.f32 %v1792_v30, %v266_v35  ;;  %v1456_v55 = vpack.c.bf16 %v751_v44, %v750_v43  ;;  %v1863_v58 = vsel %vm351_vm0, %v358_v33, %v359_v39  ;;  %v364_v59 = vrot.slane %v1851_v42, 1  ;;  %v755_v12 = vld [vmem:[#allocation2 + $0x1b8] sm:$0xff]  ;;  %v327_v24 = vld [vmem:[#allocation2 + $0x40] sm:$0xff] }
  0x4a   : > { %1441 = vmatprep.subr.bf16.mxu0 %v1440_v49  ;;  %v1392_v54 = vpack.c.bf16 %v322_v38, %v321_v37  ;;  %v365_v63 = vrot.slane %v310_v46, 1  ;;  %v367_v2 = vrot.slane %v1857_v50, 1  ;;  %v368_v3 = vrot.slane %v312_v51, 1  ;;  %v328_v25 = vld [vmem:[#allocation2 + $0x48] sm:$0xff]  ;;  %v756_v26 = vld [vmem:[#allocation2 + $0x1c0] sm:$0xff]  ;;  %v329_v35 = vld [vmem:[#allocation2 + $0x50] sm:$0xff] }
  0x4b   : > { %v1877_v4 = vadd.f32 %v1797_v31, %v290_v52  ;;  %v316_v5 = vadd.f32 %v1797_v31, %v291_v53  ;;  %v1396_v6 = vpack.c.bf16 %v324_v57, %v323_v56  ;;  %v292_v19 = vmul.f32 %v1792_v30, %v267_v7  ;;  %v330_v37 = vld [vmem:[#allocation2 + $0x58] sm:$0xff]  ;;  %v758_v38 = vld [vmem:[#allocation2 + $0x1d0] sm:$0xff]  ;;  %v331_v44 = vld [vmem:[#allocation2 + $0x60] sm:$0xff] }
  0x4c   : > { %1379 = vmatpush3.bf16.msra.mxu1 %v1376_v48  ;;  %v288_v48 = vmul.f32 %v1792_v30, %v263_v27  ;;  %v1885_v13 = vsel %vm351_vm0, %v364_v59, %v365_v63  ;;  %v1890_v16 = vsel %vm351_vm0, %v367_v2, %v368_v3  ;;  %v1464_v23 = vpack.c.bf16 %v755_v12, %v754_v11  ;;  %v757_v27 = vld [vmem:[#allocation2 + $0x1c8] sm:$0xff]  ;;  %v759_v39 = vld [vmem:[#allocation2 + $0x1d8] sm:$0xff]  ;;  %v760_v46 = vld [vmem:[#allocation2 + $0x1e0] sm:$0xff] }
  0x4d   : > { %1443 = vmatpush3.bf16.msra.mxu0 %v1440_v49  ;;  %1381 = vmatprep.subr.bf16.mxu1 %v1380_v60  ;;  %v289_v49 = vmul.f32 %v1792_v30, %v264_v28  ;;  %v373_v17 = vrot.slane %v1877_v4, 1  ;;  %v374_v18 = vrot.slane %v316_v5, 1  ;;  %v1404_v33 = vpack.c.bf16 %v328_v25, %v327_v24  ;;  %v333_v52 = vld [vmem:[#allocation2 + $0x70] sm:$0xff]  ;;  %v334_v53 = vld [vmem:[#allocation2 + $0x78] sm:$0xff] }
  0x4e   : > { %1445 = vmatprep.subr.bf16.mxu0 %v1444_v62  ;;  %v1871_v0 = vadd.f32 %v1797_v31, %v288_v48  ;;  %v1468_v34 = vpack.c.bf16 %v757_v27, %v756_v26  ;;  %v1472_v43 = vpack.c.bf16 %v759_v39, %v758_v38  ;;  %v761_v48 = vld [vmem:[#allocation2 + $0x1e8] sm:$0xff]  ;;  %v1416_v56 = vpack.c.bf16 %v334_v53, %v333_v52 }
  0x4f   : > { %v314_v1 = vadd.f32 %v1797_v31, %v289_v49  ;;  %v1476_v51 = vpack.c.bf16 %v761_v48, %v760_v46 }
  0x50   : > { %1383 = vmatpush3.bf16.msra.mxu1 %v1380_v60  ;;  %v752_v60 = vld [vmem:[#allocation2 + $0x1a0] sm:$0xff]  ;;  %v370_v14 = vrot.slane %v1871_v0, 1 }
  0x51   : > { %1447 = vmatpush3.bf16.msra.mxu0 %v1444_v62  ;;  %1385 = vmatprep.subr.bf16.mxu1 %v1384_v9  ;;  %v1868_v62 = vsel %vm351_vm0, %v361_v41, %v362_v45  ;;  %v1460_v8 = vpack.c.bf16 %v753_v61, %v752_v60  ;;  %v371_v15 = vrot.slane %v314_v1, 1  ;;  %v1408_v41 = vpack.c.bf16 %v330_v37, %v329_v35  ;;  %v332_v45 = vld [vmem:[#allocation2 + $0x68] sm:$0xff] }
  0x52   : > { %1449 = vmatprep.subr.bf16.mxu0 %v1448_v10  ;;  %v1412_v49 = vpack.c.bf16 %v332_v45, %v331_v44 }
  0x53   : > { %v1898_v28 = vsel %vm351_vm0, %v370_v14, %v371_v15 }
  0x54   : > { %1387 = vmatpush3.bf16.msra.mxu1 %v1384_v9  ;;  %v325_v9 = vld [vmem:[#allocation2 + $0x30] sm:$0xff] }
  0x55   : > { %1451 = vmatpush3.bf16.msra.mxu0 %v1448_v10  ;;  %1389 = vmatprep.subr.bf16.mxu1 %v1388_v29  ;;  %v326_v10 = vld [vmem:[#allocation2 + $0x38] sm:$0xff] }
  0x56   : > { %1453 = vmatprep.subr.bf16.mxu0 %v1452_v32  ;;  %v1400_v21 = vpack.c.bf16 %v326_v10, %v325_v9 }
  0x57   : > { %1213 = vmatmul.mubr.f32.vlgmr.msra.gmra.mrb[0].mxu1 %v1847_v36 }
  0x58   : > { %1391 = vmatpush3.bf16.msra.mxu1 %v1388_v29  ;;  %1301 = vmatmul.mubr.f32.vlgmr.msra.gmra.mrb[0].mxu0 %v1835_v22  ;;  %v1902_v29 = vsel %vm351_vm0, %v373_v17, %v374_v18 }
  0x59   : > { %1455 = vmatpush3.bf16.msra.mxu0 %v1452_v32  ;;  %1393 = vmatprep.subr.bf16.mxu1 %v1392_v54  ;;  %v1905_v32 = vadd.f32 %v1797_v31, %v292_v19 }
  0x5a   : > { %1457 = vmatprep.subr.bf16.mxu0 %v1456_v55  ;;  %1215 = vmatprep.mubr.f32.mxu1 %v1863_v58 }
  0x5b   : > { %1303 = vmatprep.mubr.f32.mxu0 %v1831_v20  ;;  %1216 = vmatmul.mubr.f32.gmra.mrb[2].mxu1 %v1868_v62  ;;  %v743_v60 = vrot.slane %v1905_v32, 1 }
  0x5c   : > { %1395 = vmatpush3.bf16.msra.mxu1 %v1392_v54  ;;  %1304 = vmatmul.mubr.f32.gmra.mrb[2].mxu0 %v1851_v42  ;;  %v762_v54 = vld [vmem:[#allocation2 + $0x1f0] sm:$0xff] }
  0x5d   : > { %1459 = vmatpush3.bf16.msra.mxu0 %v1456_v55  ;;  %1397 = vmatprep.subr.bf16.mxu1 %v1396_v6  ;;  %v763_v55 = vld [vmem:[#allocation2 + $0x1f8] sm:$0xff] }
  0x5e   : > { %1461 = vmatprep.subr.bf16.mxu0 %v1460_v8  ;;  %1218 = vmatprep.mubr.f32.mxu1 %v1885_v13 }
  0x5f   : > { %1306 = vmatprep.mubr.f32.mxu0 %v1857_v50  ;;  %1219 = vmatmul.mubr.f32.gmra.mrb[4].mxu1 %v1890_v16 }
  0x60   : > { %1399 = vmatpush3.bf16.msra.mxu1 %v1396_v6  ;;  %1307 = vmatmul.mubr.f32.gmra.mrb[4].mxu0 %v1871_v0 }
  0x61   : > { %1463 = vmatpush3.bf16.msra.mxu0 %v1460_v8  ;;  %1401 = vmatprep.subr.bf16.mxu1 %v1400_v21 }
  0x62   : > { %1465 = vmatprep.subr.bf16.mxu0 %v1464_v23  ;;  %1221 = vmatprep.mubr.f32.mxu1 %v1898_v28 }
  0x63   : > { %1309 = vmatprep.mubr.f32.mxu0 %v1877_v4  ;;  %1222 = vmatmul.mubr.f32.gmra.mrb[6].mxu1 %v1902_v29 }
  0x64   : > { %1403 = vmatpush3.bf16.msra.mxu1 %v1400_v21  ;;  %1310 = vmatmul.mubr.f32.gmra.mrb[6].mxu0 %v1905_v32 }
  0x65   : > { %1467 = vmatpush3.bf16.msra.mxu0 %v1464_v23  ;;  %1405 = vmatprep.subr.bf16.mxu1 %v1404_v33 }
  0x66   : > { %1469 = vmatprep.subr.bf16.mxu0 %v1468_v34  ;;  %1256 = vmatprep.mubr.f32.mxu1 %v1804_v40  ;;  %v1480_v40 = vpack.c.bf16 %v763_v55, %v762_v54 }
  0x67   : > { %1344 = vmatprep.mubr.f32.mxu0 %v1847_v36  ;;  %v268_v36 = vld [vmem:[%s1785_s9 + $0x88] sm:$0x1]  ;;  %s1970_s9 = scalar_lea.hbm %s2017_s5, %s1081_s26 }
  0x68   : > { %1407 = vmatpush3.bf16.msra.mxu1 %v1404_v33  ;;  %v293_v57 = vmul.f32 %v1792_v30, %v268_v36 }
  0x69   : > { %1471 = vmatpush3.bf16.msra.mxu0 %v1468_v34  ;;  %1409 = vmatprep.subr.bf16.mxu1 %v1408_v41 }
  0x6a   : > { %1473 = vmatprep.subr.bf16.mxu0 %v1472_v43  ;;  %v318_v59 = vadd.f32 %v1797_v31, %v293_v57 }
  0x6c   : > { %1411 = vmatpush3.bf16.msra.mxu1 %v1408_v41  ;;  %v744_v30 = vrot.slane %v318_v59, 1 }
  0x6d   : > { %1475 = vmatpush3.bf16.msra.mxu0 %v1472_v43  ;;  %1413 = vmatprep.subr.bf16.mxu1 %v1412_v49 }
  0x6e   : > { %1477 = vmatprep.subr.bf16.mxu0 %v1476_v51  ;;  %v745_v31 = vsel %vm351_vm0, %v743_v60, %v744_v30 }
  0x70   : > { %1415 = vmatpush3.bf16.msra.mxu1 %v1412_v49 }
  0x71   : > { %1479 = vmatpush3.bf16.msra.mxu0 %v1476_v51  ;;  %1417 = vmatprep.subr.bf16.mxu1 %v1416_v56 }
  0x72   : > { %1481 = vmatprep.subr.bf16.mxu0 %v1480_v40 }
  0x74   : > { %1419 = vmatpush3.bf16.msra.mxu1 %v1416_v56 }
  0x75   : > { %1483 = vmatpush3.bf16.msra.mxu0 %v1480_v40 }
  0x77   : > { %1257 = vmatmul.mubr.f32.vlgmr.msra.gmra.mrb[0].mxu1 %v1810_v47  ;;  %v1662_v47 = vmov 0.0  }
  0x78   : > { %1345 = vmatmul.mubr.f32.vlgmr.msra.gmra.mrb[0].mxu0 %v1863_v58  ;;  %1259 = vmatprep.mubr.f32.mxu1 %v1835_v22  ;;  %914 = vst [vmem:[%s1935_s17] sm:$0xff] %v1662_v47  ;;  %915 = vst [vmem:[%s1935_s17 + $0x8] sm:$0x3] %v1662_v47 }
  0x79   : > { %1347 = vmatprep.mubr.f32.mxu0 %v1868_v62  ;;  %918 = vst [vmem:[%s1935_s17 + $0x20] sm:$0xff] %v1662_v47  ;;  %919 = vst [vmem:[%s1935_s17 + $0x28] sm:$0x3] %v1662_v47 }
  0x7a   : > { %932 = vst [vmem:[%s1935_s17 + $0x90] sm:$0xff] %v1662_v47  ;;  %933 = vst [vmem:[%s1935_s17 + $0x98] sm:$0x3] %v1662_v47 }
  0x7b   : > { %1260 = vmatmul.mubr.f32.gmra.mrb[2].mxu1 %v1831_v20  ;;  %916 = vst [vmem:[%s1935_s17 + $0x10] sm:$0xff] %v1662_v47  ;;  %917 = vst [vmem:[%s1935_s17 + $0x18] sm:$0x3] %v1662_v47 }
  0x7c   : > { %1348 = vmatmul.mubr.f32.gmra.mrb[2].mxu0 %v1885_v13  ;;  %1262 = vmatprep.mubr.f32.mxu1 %v1851_v42  ;;  %920 = vst [vmem:[%s1935_s17 + $0x30] sm:$0xff] %v1662_v47  ;;  %921 = vst [vmem:[%s1935_s17 + $0x38] sm:$0x3] %v1662_v47 }
  0x7d   : > { %1350 = vmatprep.mubr.f32.mxu0 %v1890_v16  ;;  %922 = vst [vmem:[%s1935_s17 + $0x40] sm:$0xff] %v1662_v47  ;;  %923 = vst [vmem:[%s1935_s17 + $0x48] sm:$0x3] %v1662_v47 }
  0x7e   : > { %924 = vst [vmem:[%s1935_s17 + $0x50] sm:$0xff] %v1662_v47  ;;  %925 = vst [vmem:[%s1935_s17 + $0x58] sm:$0x3] %v1662_v47 }
  0x7f   : > { %1263 = vmatmul.mubr.f32.gmra.mrb[4].mxu1 %v1857_v50  ;;  %926 = vst [vmem:[%s1935_s17 + $0x60] sm:$0xff] %v1662_v47  ;;  %927 = vst [vmem:[%s1935_s17 + $0x68] sm:$0x3] %v1662_v47 }
  0x80   : > { %1351 = vmatmul.mubr.f32.gmra.mrb[4].mxu0 %v1898_v28  ;;  %1265 = vmatprep.mubr.f32.mxu1 %v1871_v0  ;;  %928 = vst [vmem:[%s1935_s17 + $0x70] sm:$0xff] %v1662_v47  ;;  %929 = vst [vmem:[%s1935_s17 + $0x78] sm:$0x3] %v1662_v47 }
  0x81   : > { %1353 = vmatprep.mubr.f32.mxu0 %v1902_v29  ;;  %930 = vst [vmem:[%s1935_s17 + $0x80] sm:$0xff] %v1662_v47  ;;  %931 = vst [vmem:[%s1935_s17 + $0x88] sm:$0x3] %v1662_v47 }
  0x83   : > { %1266 = vmatmul.mubr.f32.gmra.mrb[6].mxu1 %v1877_v4 }
  0x84   : > { %1354 = vmatmul.mubr.f32.gmra.mrb[6].mxu0 %v745_v31 }
 0x14a   : > { %v1258_v20 = vpop.f32.mrb[0].mxu1 }
 0x14b   : > { %v1346_v22 = vpop.f32.mrb[0].mxu0  ;;  %v572_v42 = vpop.f32.mrb[1].mxu1 }
 0x14c   : > { %v1484_v50 = vadd.f32 %v1346_v22, %v1258_v20  ;;  %v830_v58 = vpop.f32.mrb[1].mxu0 }
 0x14d   : > { %v1485_v61 = vadd.f32 %v830_v58, %v572_v42 }
 0x14e   : > { %v891_v62 = vmul.f32 %v1484_v50, %v1484_v50  ;;  %1073 = vst [vmem:[%s1935_s17 + $0x21] sm:$0xff] %v1484_v50  ;;  %v1261_v63 = vpop.f32.mrb[2].mxu1 }
 0x14f   : > { %v877_v0 = vadd.f32 %v1485_v61, %v1484_v50  ;;  %v890_v1 = vmul.f32 %v1485_v61, %v1485_v61  ;;  %1072 = vst [vmem:[%s1935_s17 + $0x11] sm:$0xff] %v1485_v61  ;;  %v1349_v2 = vpop.f32.mrb[2].mxu0  ;;  %v582_v3 = vpop.f32.mrb[3].mxu1 }
 0x150   : > { %v1486_v4 = vadd.f32 %v1349_v2, %v1261_v63  ;;  %v840_v5 = vpop.f32.mrb[3].mxu0 }
 0x151   : > { %v898_v6 = vadd.f32 %v891_v62, %v890_v1  ;;  %v1487_v7 = vadd.f32 %v840_v5, %v582_v3 }
 0x152   : > { %1075 = vst [vmem:[%s1935_s17 + $0x41] sm:$0xff] %v1486_v4  ;;  %v1264_v8 = vpop.f32.mrb[4].mxu1  ;;  %v893_v15 = vmul.f32 %v1486_v4, %v1486_v4 }
 0x153   : > { %v878_v9 = vadd.f32 %v1487_v7, %v877_v0  ;;  %v892_v10 = vmul.f32 %v1487_v7, %v1487_v7  ;;  %1074 = vst [vmem:[%s1935_s17 + $0x31] sm:$0xff] %v1487_v7  ;;  %v1352_v11 = vpop.f32.mrb[4].mxu0  ;;  %v592_v12 = vpop.f32.mrb[5].mxu1 }
 0x154   : > { %v1488_v13 = vadd.f32 %v1352_v11, %v1264_v8  ;;  %v850_v14 = vpop.f32.mrb[5].mxu0 }
 0x155   : > { %v899_v16 = vadd.f32 %v898_v6, %v892_v10  ;;  %v1489_v17 = vadd.f32 %v850_v14, %v592_v12  ;;  %v879_v18 = vadd.f32 %v1486_v4, %v878_v9 }
 0x156   : > { %1077 = vst [vmem:[%s1935_s17 + $0x61] sm:$0xff] %v1488_v13  ;;  %v1267_v19 = vpop.f32.mrb[6].mxu1  ;;  %v895_v29 = vmul.f32 %v1488_v13, %v1488_v13 }
 0x157   : > { %v880_v21 = vadd.f32 %v1489_v17, %v879_v18  ;;  %v894_v23 = vmul.f32 %v1489_v17, %v1489_v17  ;;  %v900_v24 = vadd.f32 %v899_v16, %v893_v15  ;;  %1076 = vst [vmem:[%s1935_s17 + $0x51] sm:$0xff] %v1489_v17  ;;  %v1355_v25 = vpop.f32.mrb[6].mxu0  ;;  %v602_v26 = vpop.f32.mrb[7].mxu1 }
 0x158   : > { %v1490_v27 = vadd.f32 %v1355_v25, %v1267_v19  ;;  %v860_v28 = vpop.f32.mrb[7].mxu0 }
 0x159   : > { %v901_v32 = vadd.f32 %v900_v24, %v894_v23  ;;  %v1491_v33 = vadd.f32 %v860_v28, %v602_v26  ;;  %v881_v34 = vadd.f32 %v1488_v13, %v880_v21 }
 0x15a   : > { %1079 = vst [vmem:[%s1935_s17 + $0x81] sm:$0xff] %v1490_v27  ;;  %v897_v39 = vmul.f32 %v1490_v27, %v1490_v27 }
 0x15b   : > { %v882_v35 = vadd.f32 %v1491_v33, %v881_v34  ;;  %v896_v37 = vmul.f32 %v1491_v33, %v1491_v33  ;;  %v902_v38 = vadd.f32 %v901_v32, %v895_v29  ;;  %1078 = vst [vmem:[%s1935_s17 + $0x71] sm:$0xff] %v1491_v33 }
 0x15d   : > { %v883_v41 = vadd.f32 %v1490_v27, %v882_v35  ;;  %v903_v43 = vadd.f32 %v902_v38, %v896_v37 }
 0x15f   : > { %v884_v44 = vrot.slane %v883_v41, 4  ;;  %v904_v45 = vadd.f32 %v903_v43, %v897_v39 }
 0x161   : > { %v885_v46 = vadd.f32 %v884_v44, %v883_v41  ;;  %v905_v48 = vrot.slane %v904_v45, 4 }
 0x163   : > { %v886_v49 = vrot.slane %v885_v46, 2  ;;  %v906_v51 = vadd.f32 %v905_v48, %v904_v45 }
 0x165   : > { %v887_v52 = vadd.f32 %v886_v49, %v885_v46  ;;  %v907_v53 = vrot.slane %v906_v51, 2 }
 0x167   : > { %v888_v54 = vrot.slane %v887_v52, 1  ;;  %v908_v55 = vadd.f32 %v907_v53, %v906_v51 }
 0x169   : > { %v909_v56 = vrot.slane %v908_v55, 1  ;;  %v889_v40 = vadd.f32 %v888_v54, %v887_v52 }
 0x16b   : > { %v910_v36 = vadd.f32 %v909_v56, %v908_v55 }
 0x16d   : > { %v912_v57 = vsel %vm911_vm1, %v889_v40, %v910_v36 }
 0x16e   : > { %913 = vst [vmem:[%s240_s6] sm:$0x3] %v912_v57 }
 0x16f   : > { %1604 = shalt.err (!%p1601_p7)
}
 0x170   : > { %s1605_s14 = scalar_lea.hbm %s1970_s9, 32  ;;  %s1609_s17 = scalar_lea.hbm %s2017_s5, 64 }
 0x171   : > { %p1606_p8 = scmp.ne.s32.totalorder %s1970_s9, %s1605_s14  ;;  %p1610_p1 = scmp.lt.u32.totalorder %s1970_s9, %s2017_s5 }
 0x172   : > { %p1611_p0 = scmp.lt.u32.totalorder %s1609_s17, %s1605_s14  ;;  %p1613_p6 = scmp.lt.u32.totalorder %s1605_s14, %s1970_s9 }
 0x173   : > { %p1607_p11 = pnand %p1606_p8, %p2028_p9 }
 0x174   : > { %p1612_p5 = por %p1611_p0, %p1610_p1 }
 0x175   : > { %p1608_p13 = pneg %p1607_p11 }
 0x176   : > { %p1614_p10 = por %p1613_p6, %p1612_p5 }
 0x178   : > { %p1615_p12 = pnand %p1614_p10, %p1608_p13 }
 0x17a   : > { %1618 = shalt.err (!%p1615_p12)
}
 0x17b   : > { %1514 = dma.vmem_to_hbm [thread:$0]  (%p2028_p9), %s1972_s30, 32, %s1970_s9, %s949_s10  }
 0x17c PF: > { %p1526_p2 = scmp.ge.s32.totalorder %s1657_s21, 2  ;;  %s985_s26 = sand.u32 1, %s1645_s18  }
 0x17d   : > { %p2029_p3 = scmp.ne.s32.totalorder %s2022_s29, 0  ;;  %s986_s6 = scalar_lea.sflag [#allocation4], %s985_s26 }
 0x17f   : > { %p1521_p4 = pnand %p1526_p2, %p2029_p3 }
 0x181   : > { %1640 = dma.done.wait (!%p1521_p4), %s986_s6, 32  }
 0x182   : > { %1642 = vsyncadd (!%p1521_p4), %s986_s6, 4294967264  ;;  %p17_p7 = scmp.ge.s32.totalorder %s1719_s24, 4   ;;  %s2030_s18 = smov %s1649_s19 }
 0x183   : > { %s2031_s19 = smov %s1653_s20  ;;  %s2032_s20 = smov %s1730_s27 }
 0x184   : > { %s2033_s21 = smov %s1719_s24  ;;  %19 = sbr.rel (!%p17_p7) target bundleno = 4 (0x4), region = 92 }
 0x18b   :  { %991 = vsyncpa [#allocation3], 1 }
 0x18c   :  { %993 = vsyncpa [#allocation3 + $0x1], 1 }
 0x18d   :  { %994 = vsyncpa [#allocation4], 1 }
 0x18e   :  { %996 = vsyncpa [#allocation4 + $0x1], 1 }

</bundles_post_ra>
